<compile_context>
chip_gen: v7x
topology: tpu7x:2x2x1
jax: 0.10.0
libtpu: 0.0.40
codegen_flags: <defaults>
</compile_context>

<pallas_src>
import numpy as np
import jax
import jax.numpy as jnp
from jax.experimental import pallas as pl
from jax.experimental.pallas import tpu as pltpu

# ---- HumanVocalFilter default hyper-parameters (deterministic, from __init__) ----
SAMPLE_RATE = 24000
NYQUIST = SAMPLE_RATE / 2.0
GENDER = "neutral"
FORMANTS = {"male": (500, 1500, 2500, 3500), "female": (550, 1650, 2750, 3850),
            "neutral": (525, 1575, 2625, 3675), "child": (650, 1750, 2850, 3950)}[GENDER]
VOCAL_RANGE = {"male": (80, 700), "female": (160, 1100),
               "neutral": (100, 900), "child": (200, 1200)}[GENDER]
FORMANT_Q = (7.0, 6.0, 5.0, 4.0)
BREATHINESS = 0.3
PRESENCE_AMOUNT = 0.5
EXCITER_AMOUNT = 0.3
ARTICULATION = 0.5
# TODO(synk): articulation != 0.5 path (frame-axis conv1d smoothing + attack/decay curves)
# is a no-op at the default setting and is not implemented in the kernel.

LANE = 128
SUB = 16  # bf16 sublane granularity -> keeps every multi-step block (16,128)/(8,128) aligned


def _ceil_to(x, m):
    return ((x + m - 1) // m) * m


def _build_masks(n_freq):
    """Per-frequency multiplicative enhancement masks and the exciter high-freq mask."""
    f32 = jnp.float32
    freq = jnp.linspace(0.0, NYQUIST, n_freq, dtype=f32)

    formant_mask = jnp.ones((n_freq,), f32)
    for i, f0 in enumerate(FORMANTS):
        if f0 >= NYQUIST:
            continue
        bw = f0 / FORMANT_Q[i]
        num = (bw / 2.0) ** 2
        peaks = num / ((freq - f0) ** 2 + num)
        formant_mask = formant_mask + (1.0 - i * 0.15) * peaks
    formant_mask = 0.7 + 0.3 * formant_mask / jnp.max(formant_mask)

    lo, hi = VOCAL_RANGE
    low_shelf = 1.0 / (1.0 + jnp.exp(-(freq - lo) * 0.05))
    high_shelf = 1.0 / (1.0 + jnp.exp((freq - hi) * 0.01))
    vocal_mask = 1.0 + 0.3 * low_shelf * high_shelf

    breath_mask = 1.0 + BREATHINESS / (1.0 + jnp.exp(-(freq - 2500.0) * 0.005))

    presence = jnp.exp(-0.5 * ((freq - 6000.0) / 2000.0) ** 2)
    presence_mask = 1.0 + PRESENCE_AMOUNT * presence / jnp.max(presence)

    combined = formant_mask * vocal_mask * breath_mask * presence_mask
    high_mask = 1.0 / (1.0 + jnp.exp(-(freq - 7000.0) * 0.005))
    return combined.astype(f32), high_mask.astype(f32)


def _make_kernel(B_tile, F, frame_size, fft_size, fbp, T_pad, L_pad):
    """Kernel closure; all shape parameters are static Python ints."""
    bf16 = jnp.bfloat16

    def kernel(mag_ref, frm_ref, masks_ref, c_ref, d_ref, er_ref, ei_ref,
               out_ref, acc_ref):
        # --- magnitude enhancement (f32 elementwise, VPU/EUP) ---
        mag = mag_ref[...]                                    # [M, NF_p] f32
        comb = masks_ref[0:1, :]                              # [1, NF_p]
        high = masks_ref[1:2, :]
        enh = mag * comb                                      # formant/vocal/breath/presence
        enh = enh + EXCITER_AMOUNT * high * (jnp.tanh(enh * 3.0) * enh)   # harmonic exciter

        # --- fused irfft+hann+causal-roll+rfft of the IR: one matmul [M,NF_p]x[NF_p,2*fbp] ---
        ir_s = jnp.dot(enh.astype(bf16), c_ref[...],
                       preferred_element_type=jnp.float32)    # [M, 2*fbp] = [real | imag]

        # --- rfft of (bf16) audio frames: one matmul [M,FS_p]x[FS_p,2*fbp] ---
        a_s = jnp.dot(frm_ref[...], d_ref[...],
                      preferred_element_type=jnp.float32)     # [M, 2*fbp]

        # --- packed complex multiply (Nyquist bin packed into imag slot of DC, column 0) ---
        a_r, a_i = a_s[:, :fbp], a_s[:, fbp:]
        ir_r, ir_i = ir_s[:, :fbp], ir_s[:, fbp:]
        col0 = jax.lax.broadcasted_iota(jnp.int32, (1, fbp), 1) == 0
        cross = a_i * ir_i
        p_r = a_r * ir_r - jnp.where(col0, 0.0, cross)        # DC/Nyquist are purely real
        p_i = jnp.where(col0, cross, a_r * ir_i + a_i * ir_r)

        # --- inverse rfft: two accumulated dots (no lane-concatenate temp) ---
        frames_out = jnp.dot(p_r.astype(bf16), er_ref[...],
                             preferred_element_type=jnp.float32)          # [M, fft_size]
        frames_out = frames_out + jnp.dot(p_i.astype(bf16), ei_ref[...],
                                          preferred_element_type=jnp.float32)
        frames_out = frames_out.reshape(B_tile, F, fft_size)

        # --- overlap-add into VMEM scratch: frame 0 written, only tail zeroed, then += ---
        acc_ref[:, :fft_size] = frames_out[:, 0, :]
        if L_pad > fft_size:
            acc_ref[:, fft_size:] = jnp.zeros((B_tile, L_pad - fft_size), jnp.float32)
        for f in range(1, F):
            s = f * frame_size
            acc_ref[:, s:s + fft_size] += frames_out[:, f, :]
        # TODO(synk): when frame_size % 128 != 0 these slice starts are lane-misaligned
        # (masked RMW); a transposed final matmul would reduce them to mod-8 offsets.

        # lane/sublane-dense output store; wrapper crops to [:B, :T]
        out_ref[...] = acc_ref[:, :T_pad]

    return kernel


def human_vocal_filter(audio, magnitudes):
    f32, bf16 = jnp.float32, jnp.bfloat16
    B, T = audio.shape
    Bm, F, NF = magnitudes.shape
    assert B == Bm
    frame_size = -(-T // F)  # ceil, matches torch framing
    assert frame_size * F == T, "audio length must be n_frames * frame_size"
    # TODO(synk): the single-frame path (frame_size == audio_size) with delay compensation
    #             from _crop_and_compensate_delay is not implemented (multi-frame path only).
    ir_size = 2 * (NF - 1)
    fft_size = int(2 ** np.ceil(np.log2(ir_size + frame_size - 1)))
    half = fft_size // 2
    fft_bins = half + 1

    # lane-dense padded widths (Nyquist packing => spectral width is exactly fft_size//2)
    NF_p = _ceil_to(NF, LANE)
    FS_p = _ceil_to(frame_size, LANE)
    fbp = _ceil_to(half, LANE)
    T_pad = _ceil_to(T, LANE)
    L_pad = _ceil_to((F - 1) * frame_size + fft_size, LANE)

    combined, high_mask = _build_masks(NF)
    masks = jnp.zeros((2, NF_p), f32)
    masks = masks.at[0, :NF].set(combined).at[1, :NF].set(high_mask)

    # irfft(real spectrum) + periodic-hann window + causal roll folded into [NF, ir_size]
    irfft_mat = jnp.fft.irfft(jnp.eye(NF, dtype=f32), n=ir_size, axis=-1)
    n_idx = jnp.arange(ir_size, dtype=f32)
    hann = 0.5 * (1.0 - jnp.cos(2.0 * np.pi * n_idx / ir_size))
    shift = (ir_size + 1) // 2
    m_ir = jnp.roll(irfft_mat * jnp.roll(hann, shift)[None, :], shift, axis=1)  # [NF, ir_size]

    # Fused IR rfft, Nyquist packed: C = [Re(bins 0..half-1) | Nyq_real, Im(bins 1..half-1)]
    r_full = jnp.fft.rfft(jnp.eye(ir_size, dtype=f32), n=fft_size, axis=-1)     # [ir_size, bins]
    crr = m_ir @ jnp.real(r_full).astype(f32)
    cri = m_ir @ jnp.imag(r_full).astype(f32)
    C = jnp.zeros((NF_p, 2 * fbp), f32)
    C = C.at[:NF, :half].set(crr[:, :half])
    C = C.at[:NF, fbp].set(crr[:, half])                       # Nyquist -> imag slot of DC
    C = C.at[:NF, fbp + 1:fbp + half].set(cri[:, 1:half])

    # Packed rfft of the zero-padded audio frame
    d_full = jnp.fft.rfft(jnp.eye(frame_size, dtype=f32), n=fft_size, axis=-1)
    dr, di = jnp.real(d_full).astype(f32), jnp.imag(d_full).astype(f32)
    D = jnp.zeros((FS_p, 2 * fbp), f32)
    D = D.at[:frame_size, :half].set(dr[:, :half])
    D = D.at[:frame_size, fbp].set(dr[:, half])
    D = D.at[:frame_size, fbp + 1:fbp + half].set(di[:, 1:half])

    # Packed inverse rfft, split real/imag so the kernel does two accumulated dots
    er_full = jnp.fft.irfft(jnp.eye(fft_bins, dtype=f32), n=fft_size, axis=-1)   # [bins, fft_size]
    ei_full = jnp.fft.irfft(1j * jnp.eye(fft_bins, dtype=f32), n=fft_size, axis=-1).astype(f32)
    E_r = jnp.zeros((fbp, fft_size), f32).at[:half, :].set(er_full[:half])
    E_i = jnp.zeros((fbp, fft_size), f32)
    E_i = E_i.at[0, :].set(er_full[half])                      # Nyquist basis rides in row 0
    E_i = E_i.at[1:half, :].set(ei_full[1:half])

    # bf16 DFT constants (f32 MXU accumulation inside the kernel)
    C, D, E_r, E_i = (x.astype(bf16) for x in (C, D, E_r, E_i))

    # Batch tiling: ~512 rows per step, tiles a multiple of 16 sublanes (or grid == 1 with
    # block == full array), and >= 2 grid steps when the batch allows it (v7x has 2 TCs).
    if B < 2 * SUB:
        B_tile = B                       # single step; blocks equal the full arrays
    else:
        B_tile = max(SUB, (max(1, 512 // F) // SUB) * SUB)
        half_b = ((_ceil_to(B, SUB) // 2) // SUB) * SUB
        if half_b >= SUB:
            B_tile = min(B_tile, half_b)
    B_pad = _ceil_to(B, B_tile)
    grid = (B_pad // B_tile,)
    M = B_tile * F

    # Flattened, lane/sublane-dense inputs (no in-kernel reshape); frames pre-cast to bf16
    mags_flat = jnp.zeros((B_pad * F, NF_p), f32)
    mags_flat = mags_flat.at[:B * F, :NF].set(magnitudes.astype(f32).reshape(B * F, NF))
    frames_flat = jnp.zeros((B_pad * F, FS_p), bf16)
    frames_flat = frames_flat.at[:B * F, :frame_size].set(
        audio.reshape(B * F, frame_size).astype(bf16))

    # Explicit scoped-VMEM budget (v5e default is only 16 MiB; v7x physical is 64 MiB)
    const_bytes = 2 * NF_p * 4 + (NF_p + FS_p) * 2 * fbp * 2 + 2 * fbp * fft_size * 2
    tile_bytes = 2 * (M * NF_p * 4 + M * FS_p * 2 + B_tile * T_pad * 4)
    tmp_bytes = M * (NF_p + 8 * fbp + 2 * fft_size) * 4 + B_tile * L_pad * 4
    vmem_limit = int(min(max(const_bytes + tile_bytes + tmp_bytes + (8 << 20), 32 << 20),
                         64 << 20))

    kernel = _make_kernel(B_tile, F, frame_size, fft_size, fbp, T_pad, L_pad)
    invariant = pl.Buffered(buffer_count=1)   # grid-invariant operands: single-buffer

    out = pl.pallas_call(
        kernel,
        out_shape=jax.ShapeDtypeStruct((B_pad, T_pad), f32),
        grid=grid,
        in_specs=[
            pl.BlockSpec((M, NF_p), lambda b: (b, 0)),                               # magnitudes
            pl.BlockSpec((M, FS_p), lambda b: (b, 0)),                               # frames (bf16)
            pl.BlockSpec((2, NF_p), lambda b: (0, 0), pipeline_mode=invariant),      # masks
            pl.BlockSpec((NF_p, 2 * fbp), lambda b: (0, 0), pipeline_mode=invariant),  # C
            pl.BlockSpec((FS_p, 2 * fbp), lambda b: (0, 0), pipeline_mode=invariant),  # D
            pl.BlockSpec((fbp, fft_size), lambda b: (0, 0), pipeline_mode=invariant),  # E_r
            pl.BlockSpec((fbp, fft_size), lambda b: (0, 0), pipeline_mode=invariant),  # E_i
        ],
        out_specs=pl.BlockSpec((B_tile, T_pad), lambda b: (b, 0)),
        scratch_shapes=[pltpu.VMEM((B_tile, L_pad), jnp.float32)],   # OLA accumulator
        compiler_params=pltpu.CompilerParams(
            dimension_semantics=("parallel",), vmem_limit_bytes=vmem_limit),
    )(mags_flat, frames_flat, masks, C, D, E_r, E_i)
    return out[:B, :T]


def reference(audio, magnitudes):
    """Pure-JAX mirror of the PyTorch forward (defaults), using jnp.fft."""
    B, T = audio.shape
    _, F, NF = magnitudes.shape
    frame_size = T // F
    ir_size = 2 * (NF - 1)
    fft_size = int(2 ** np.ceil(np.log2(ir_size + frame_size - 1)))

    combined, high = _build_masks(NF)
    enh = magnitudes * combined[None, None, :]
    enh = enh + EXCITER_AMOUNT * high[None, None, :] * (jnp.tanh(enh * 3.0) * enh)

    ir = jnp.fft.irfft(enh, axis=-1)
    shift = (ir_size + 1) // 2
    hann = 0.5 * (1.0 - jnp.cos(2.0 * np.pi * jnp.arange(ir_size) / ir_size))
    ir = ir * jnp.roll(hann, shift)[None, None, :]
    ir = jnp.roll(ir, shift, axis=-1)

    frames = audio.reshape(B, F, frame_size)
    prod = jnp.fft.rfft(frames, fft_size) * jnp.fft.rfft(ir, fft_size)
    frames_out = jnp.fft.irfft(prod, fft_size)

    out = jnp.zeros((B, (F - 1) * frame_size + fft_size), jnp.float32)
    for f in range(F):
        out = out.at[:, f * frame_size:f * frame_size + fft_size].add(frames_out[:, f])
    return out[:, :T]


if __name__ == "__main__":
    key = jax.random.PRNGKey(0)
    k1, k2, k3, k4 = jax.random.split(key, 4)

    def check(B, F, NF, frame_size, ka, km):
        T = F * frame_size
        audio = jax.random.normal(ka, (B, T), dtype=jnp.float32)
        mags = jax.random.uniform(km, (B, F, NF), dtype=jnp.float32)
        out = jax.block_until_ready(human_vocal_filter(audio, mags))
        ref = reference(audio, mags)
        err = float(jnp.max(jnp.abs(out - ref)))
        scale = float(jnp.max(jnp.abs(ref))) + 1e-6
        assert err <= 5e-2 * scale + 5e-3, f"kernel/reference mismatch: {err} (scale {scale})"

    check(2, 4, 65, 64, k1, k2)    # small case: single grid step (blocks == full arrays)
    check(40, 4, 65, 64, k3, k4)   # multi-step grid (B_tile=16, grid=3) + batch padding
    print("KERNEL_OK")
</pallas_src>

<mosaic_0001>
module attributes {stable_mosaic.version = 11 : i64} {
  func.func @kernel(%arg0: i32, %arg1: memref<8x128xf32, #tpu.memory_space<vmem>>, %arg2: memref<8x128xbf16, #tpu.memory_space<vmem>>, %arg3: memref<2x128xf32, #tpu.memory_space<vmem>>, %arg4: memref<128x256xbf16, #tpu.memory_space<vmem>>, %arg5: memref<128x256xbf16, #tpu.memory_space<vmem>>, %arg6: memref<128x256xbf16, #tpu.memory_space<vmem>>, %arg7: memref<128x256xbf16, #tpu.memory_space<vmem>>, %arg8: memref<2x256xf32, #tpu.memory_space<vmem>>, %arg9: memref<2x512xf32, #tpu.memory_space<vmem>>) attributes {dimension_semantics = [#tpu.dimension_semantics<parallel>], iteration_bounds = array<i64: 1>, scalar_prefetch = 0 : i64, scratch_operands = 1 : i64, tpu.core_type = #tpu.core_type<tc>, window_params = [{transform_indices = @transform_0, window_bounds = array<i64: 8, 128>}, {transform_indices = @transform_1, window_bounds = array<i64: 8, 128>}, {pipeline_mode = #tpu.pipeline_mode<synchronous>, transform_indices = @transform_2, window_bounds = array<i64: 2, 128>}, {pipeline_mode = #tpu.pipeline_mode<synchronous>, transform_indices = @transform_3, window_bounds = array<i64: 128, 256>}, {pipeline_mode = #tpu.pipeline_mode<synchronous>, transform_indices = @transform_4, window_bounds = array<i64: 128, 256>}, {pipeline_mode = #tpu.pipeline_mode<synchronous>, transform_indices = @transform_5, window_bounds = array<i64: 128, 256>}, {pipeline_mode = #tpu.pipeline_mode<synchronous>, transform_indices = @transform_6, window_bounds = array<i64: 128, 256>}, {transform_indices = @transform_7, window_bounds = array<i64: 2, 256>}]} {
    %c0 = arith.constant 0 : index
    %c0_0 = arith.constant 0 : index
    %0 = vector.load %arg1[%c0, %c0_0] : memref<8x128xf32, #tpu.memory_space<vmem>>, vector<8x128xf32>
    %c0_1 = arith.constant 0 : index
    %c0_2 = arith.constant 0 : index
    %1 = vector.load %arg3[%c0_1, %c0_2] : memref<2x128xf32, #tpu.memory_space<vmem>>, vector<1x128xf32>
    %c1 = arith.constant 1 : index
    %c0_3 = arith.constant 0 : index
    %2 = vector.load %arg3[%c1, %c0_3] : memref<2x128xf32, #tpu.memory_space<vmem>>, vector<1x128xf32>
    %3 = vector.broadcast %1 : vector<1x128xf32> to vector<8x128xf32>
    %4 = arith.mulf %0, %3 : vector<8x128xf32>
    %cst = arith.constant 3.000000e-01 : f32
    %5 = vector.broadcast %cst : f32 to vector<1x128xf32>
    %6 = arith.mulf %5, %2 : vector<1x128xf32>
    %cst_4 = arith.constant 3.000000e+00 : f32
    %7 = vector.broadcast %cst_4 : f32 to vector<8x128xf32>
    %8 = arith.mulf %4, %7 : vector<8x128xf32>
    %9 = math.tanh %8 : vector<8x128xf32>
    %10 = arith.mulf %9, %4 : vector<8x128xf32>
    %11 = vector.broadcast %6 : vector<1x128xf32> to vector<8x128xf32>
    %12 = arith.mulf %11, %10 : vector<8x128xf32>
    %13 = arith.addf %4, %12 : vector<8x128xf32>
    %14 = arith.truncf %13 : vector<8x128xf32> to vector<8x128xbf16>
    %c0_5 = arith.constant 0 : index
    %c0_6 = arith.constant 0 : index
    %15 = vector.load %arg4[%c0_5, %c0_6] : memref<128x256xbf16, #tpu.memory_space<vmem>>, vector<128x256xbf16>
    %cst_7 = arith.constant dense<0.000000e+00> : vector<8x256xf32>
    %16 = tpu.matmul %14, %15, %cst_7 {dimension_numbers = #tpu.dot_dimension_numbers<[1], [0], [0], [1], [0, 0, 1, 1], [], []>} : vector<8x128xbf16>, vector<128x256xbf16>, vector<8x256xf32> -> vector<8x256xf32>
    %c0_8 = arith.constant 0 : index
    %c0_9 = arith.constant 0 : index
    %17 = vector.load %arg2[%c0_8, %c0_9] : memref<8x128xbf16, #tpu.memory_space<vmem>>, vector<8x128xbf16>
    %c0_10 = arith.constant 0 : index
    %c0_11 = arith.constant 0 : index
    %18 = vector.load %arg5[%c0_10, %c0_11] : memref<128x256xbf16, #tpu.memory_space<vmem>>, vector<128x256xbf16>
    %cst_12 = arith.constant dense<0.000000e+00> : vector<8x256xf32>
    %19 = tpu.matmul %17, %18, %cst_12 {dimension_numbers = #tpu.dot_dimension_numbers<[1], [0], [0], [1], [0, 0, 1, 1], [], []>} : vector<8x128xbf16>, vector<128x256xbf16>, vector<8x256xf32> -> vector<8x256xf32>
    %20 = vector.extract_strided_slice %19 {offsets = [0, 0], sizes = [8, 128], strides = [1, 1]} : vector<8x256xf32> to vector<8x128xf32>
    %21 = vector.extract_strided_slice %19 {offsets = [0, 128], sizes = [8, 128], strides = [1, 1]} : vector<8x256xf32> to vector<8x128xf32>
    %22 = vector.extract_strided_slice %16 {offsets = [0, 0], sizes = [8, 128], strides = [1, 1]} : vector<8x256xf32> to vector<8x128xf32>
    %23 = vector.extract_strided_slice %16 {offsets = [0, 128], sizes = [8, 128], strides = [1, 1]} : vector<8x256xf32> to vector<8x128xf32>
    %24 = tpu.iota {dimensions = array<i32: 1>} : vector<1x128xi32>
    %c0_i32 = arith.constant 0 : i32
    %25 = vector.broadcast %c0_i32 : i32 to vector<1x128xi32>
    %26 = arith.cmpi eq, %24, %25 : vector<1x128xi32>
    %27 = arith.mulf %21, %23 : vector<8x128xf32>
    %28 = arith.mulf %20, %22 : vector<8x128xf32>
    %cst_13 = arith.constant 0.000000e+00 : f32
    %29 = vector.shape_cast %26 : vector<1x128xi1> to vector<1x128xi1>
    %30 = vector.broadcast %29 : vector<1x128xi1> to vector<8x128xi1>
    %31 = vector.broadcast %cst_13 : f32 to vector<8x128xf32>
    %32 = arith.select %30, %31, %27 : vector<8x128xi1>, vector<8x128xf32>
    %33 = arith.subf %28, %32 : vector<8x128xf32>
    %34 = arith.mulf %20, %23 : vector<8x128xf32>
    %35 = arith.mulf %21, %22 : vector<8x128xf32>
    %36 = arith.addf %34, %35 : vector<8x128xf32>
    %37 = vector.shape_cast %26 : vector<1x128xi1> to vector<1x128xi1>
    %38 = vector.broadcast %37 : vector<1x128xi1> to vector<8x128xi1>
    %39 = arith.select %38, %27, %36 : vector<8x128xi1>, vector<8x128xf32>
    %40 = arith.truncf %33 : vector<8x128xf32> to vector<8x128xbf16>
    %c0_14 = arith.constant 0 : index
    %c0_15 = arith.constant 0 : index
    %41 = vector.load %arg6[%c0_14, %c0_15] : memref<128x256xbf16, #tpu.memory_space<vmem>>, vector<128x256xbf16>
    %cst_16 = arith.constant dense<0.000000e+00> : vector<8x256xf32>
    %42 = tpu.matmul %40, %41, %cst_16 {dimension_numbers = #tpu.dot_dimension_numbers<[1], [0], [0], [1], [0, 0, 1, 1], [], []>} : vector<8x128xbf16>, vector<128x256xbf16>, vector<8x256xf32> -> vector<8x256xf32>
    %43 = arith.truncf %39 : vector<8x128xf32> to vector<8x128xbf16>
    %c0_17 = arith.constant 0 : index
    %c0_18 = arith.constant 0 : index
    %44 = vector.load %arg7[%c0_17, %c0_18] : memref<128x256xbf16, #tpu.memory_space<vmem>>, vector<128x256xbf16>
    %cst_19 = arith.constant dense<0.000000e+00> : vector<8x256xf32>
    %45 = tpu.matmul %43, %44, %cst_19 {dimension_numbers = #tpu.dot_dimension_numbers<[1], [0], [0], [1], [0, 0, 1, 1], [], []>} : vector<8x128xbf16>, vector<128x256xbf16>, vector<8x256xf32> -> vector<8x256xf32>
    %46 = arith.addf %42, %45 : vector<8x256xf32>
    %47 = vector.shape_cast %46 : vector<8x256xf32> to vector<2x4x256xf32>
    %48 = vector.extract_strided_slice %47 {offsets = [0, 0, 0], sizes = [2, 1, 256], strides = [1, 1, 1]} : vector<2x4x256xf32> to vector<2x1x256xf32>
    %49 = vector.shape_cast %48 : vector<2x1x256xf32> to vector<2x256xf32>
    %c0_20 = arith.constant 0 : index
    %c0_21 = arith.constant 0 : index
    %50 = vector.load %arg9[%c0_20, %c0_21] : memref<2x512xf32, #tpu.memory_space<vmem>>, vector<2x256xf32>
    tpu.vector_store %arg9[%c0_20, %c0_21], %49 {strides = array<i32>} : memref<2x512xf32, #tpu.memory_space<vmem>>, vector<2x256xf32>,
    %cst_22 = arith.constant 0.000000e+00 : f32
    %51 = vector.broadcast %cst_22 : f32 to vector<2x256xf32>
    %c0_23 = arith.constant 0 : index
    %c256 = arith.constant 256 : index
    %52 = vector.load %arg9[%c0_23, %c256] : memref<2x512xf32, #tpu.memory_space<vmem>>, vector<2x256xf32>
    tpu.vector_store %arg9[%c0_23, %c256], %51 {strides = array<i32>} : memref<2x512xf32, #tpu.memory_space<vmem>>, vector<2x256xf32>,
    %c0_24 = arith.constant 0 : index
    %c64 = arith.constant 64 : index
    %53 = vector.load %arg9[%c0_24, %c64] : memref<2x512xf32, #tpu.memory_space<vmem>>, vector<2x256xf32>
    %54 = vector.extract_strided_slice %47 {offsets = [0, 1, 0], sizes = [2, 1, 256], strides = [1, 1, 1]} : vector<2x4x256xf32> to vector<2x1x256xf32>
    %55 = vector.shape_cast %54 : vector<2x1x256xf32> to vector<2x256xf32>
    %56 = arith.addf %53, %55 : vector<2x256xf32>
    %c0_25 = arith.constant 0 : index
    %c64_26 = arith.constant 64 : index
    %57 = vector.load %arg9[%c0_25, %c64_26] : memref<2x512xf32, #tpu.memory_space<vmem>>, vector<2x256xf32>
    tpu.vector_store %arg9[%c0_25, %c64_26], %56 {strides = array<i32>} : memref<2x512xf32, #tpu.memory_space<vmem>>, vector<2x256xf32>,
    %c0_27 = arith.constant 0 : index
    %c128 = arith.constant 128 : index
    %58 = vector.load %arg9[%c0_27, %c128] : memref<2x512xf32, #tpu.memory_space<vmem>>, vector<2x256xf32>
    %59 = vector.extract_strided_slice %47 {offsets = [0, 2, 0], sizes = [2, 1, 256], strides = [1, 1, 1]} : vector<2x4x256xf32> to vector<2x1x256xf32>
    %60 = vector.shape_cast %59 : vector<2x1x256xf32> to vector<2x256xf32>
    %61 = arith.addf %58, %60 : vector<2x256xf32>
    %c0_28 = arith.constant 0 : index
    %c128_29 = arith.constant 128 : index
    %62 = vector.load %arg9[%c0_28, %c128_29] : memref<2x512xf32, #tpu.memory_space<vmem>>, vector<2x256xf32>
    tpu.vector_store %arg9[%c0_28, %c128_29], %61 {strides = array<i32>} : memref<2x512xf32, #tpu.memory_space<vmem>>, vector<2x256xf32>,
    %c0_30 = arith.constant 0 : index
    %c192 = arith.constant 192 : index
    %63 = vector.load %arg9[%c0_30, %c192] : memref<2x512xf32, #tpu.memory_space<vmem>>, vector<2x256xf32>
    %64 = vector.extract_strided_slice %47 {offsets = [0, 3, 0], sizes = [2, 1, 256], strides = [1, 1, 1]} : vector<2x4x256xf32> to vector<2x1x256xf32>
    %65 = vector.shape_cast %64 : vector<2x1x256xf32> to vector<2x256xf32>
    %66 = arith.addf %63, %65 : vector<2x256xf32>
    %c0_31 = arith.constant 0 : index
    %c192_32 = arith.constant 192 : index
    %67 = vector.load %arg9[%c0_31, %c192_32] : memref<2x512xf32, #tpu.memory_space<vmem>>, vector<2x256xf32>
    tpu.vector_store %arg9[%c0_31, %c192_32], %66 {strides = array<i32>} : memref<2x512xf32, #tpu.memory_space<vmem>>, vector<2x256xf32>,
    %c0_33 = arith.constant 0 : index
    %c0_34 = arith.constant 0 : index
    %68 = vector.load %arg9[%c0_33, %c0_34] : memref<2x512xf32, #tpu.memory_space<vmem>>, vector<2x256xf32>
    %c0_35 = arith.constant 0 : index
    %c0_36 = arith.constant 0 : index
    %69 = vector.load %arg8[%c0_35, %c0_36] : memref<2x256xf32, #tpu.memory_space<vmem>>, vector<2x256xf32>
    tpu.vector_store %arg8[%c0_35, %c0_36], %68 {strides = array<i32>} : memref<2x256xf32, #tpu.memory_space<vmem>>, vector<2x256xf32>,
    return
  }
  func.func @transform_0(%arg0: i32) -> (i32, i32) {
    %c0_i32 = arith.constant 0 : i32
    %c0_i32_0 = arith.constant 0 : i32
    return %arg0, %c0_i32 : i32, i32
  }
  func.func @transform_1(%arg0: i32) -> (i32, i32) {
    %c0_i32 = arith.constant 0 : i32
    %c0_i32_0 = arith.constant 0 : i32
    return %arg0, %c0_i32 : i32, i32
  }
  func.func @transform_2(%arg0: i32) -> (i32, i32) {
    %c0_i32 = arith.constant 0 : i32
    %c0_i32_0 = arith.constant 0 : i32
    %c0_i32_1 = arith.constant 0 : i32
    return %c0_i32, %c0_i32_0 : i32, i32
  }
  func.func @transform_3(%arg0: i32) -> (i32, i32) {
    %c0_i32 = arith.constant 0 : i32
    %c0_i32_0 = arith.constant 0 : i32
    %c0_i32_1 = arith.constant 0 : i32
    return %c0_i32, %c0_i32_0 : i32, i32
  }
  func.func @transform_4(%arg0: i32) -> (i32, i32) {
    %c0_i32 = arith.constant 0 : i32
    %c0_i32_0 = arith.constant 0 : i32
    %c0_i32_1 = arith.constant 0 : i32
    return %c0_i32, %c0_i32_0 : i32, i32
  }
  func.func @transform_5(%arg0: i32) -> (i32, i32) {
    %c0_i32 = arith.constant 0 : i32
    %c0_i32_0 = arith.constant 0 : i32
    %c0_i32_1 = arith.constant 0 : i32
    return %c0_i32, %c0_i32_0 : i32, i32
  }
  func.func @transform_6(%arg0: i32) -> (i32, i32) {
    %c0_i32 = arith.constant 0 : i32
    %c0_i32_0 = arith.constant 0 : i32
    %c0_i32_1 = arith.constant 0 : i32
    return %c0_i32, %c0_i32_0 : i32, i32
  }
  func.func @transform_7(%arg0: i32) -> (i32, i32) {
    %c0_i32 = arith.constant 0 : i32
    %c0_i32_0 = arith.constant 0 : i32
    return %arg0, %c0_i32 : i32, i32
  }
}

</mosaic_0001>

<bundles_post_ra>
// kernel: tpu_custom_call.1
= control target key start
LH: loop header
LB: loop body
LE: loop exit
PB: predicated region body
PF: predicated region fallthrough
CT: control target
= control target key end

     0   :  { %12 = vsyncpa [#allocation4], 0  ;;  %s1319_s0 = inlined_call_operand.hbm [shape: f32[8,128], index: 0, kind: input, shape index: {}]   ;;  %s1320_s1 = inlined_call_operand.hbm [shape: bf16[8,128], index: 1, kind: input, shape index: {}]   ;;  %s1321_s2 = inlined_call_operand.vmem [shape: f32[2,128], index: 2, kind: input, shape index: {}]   ;;  %s1322_s3 = inlined_call_operand.hbm [shape: bf16[128,256], index: 3, kind: input, shape index: {}]   ;;  %s1323_s4 = inlined_call_operand.hbm [shape: bf16[128,256], index: 4, kind: input, shape index: {}]   ;;  %s1324_s5 = inlined_call_operand.hbm [shape: bf16[128,256], index: 5, kind: input, shape index: {}]   ;;  %s1325_s6 = inlined_call_operand.hbm [shape: bf16[128,256], index: 6, kind: input, shape index: {}]   ;;  %s1326_s7 = inlined_call_operand.hbm [shape: f32[2,256], index: 7, kind: output, shape index: {}]  }
   0x1   :  { %13 = vsyncpa [#allocation7], 0 }
   0x2   :  { %14 = vsyncpa [#allocation10], 0 }
   0x3   :  { %15 = vsyncpa [#allocation13], 0 }
   0x4   :  { %16 = vsyncpa [#allocation5], 0  ;;  %s1136_s24 = smov [#allocation6]   ;;  %s972_s28 = scalar_lea.hbm %s1320_s1, 64 }
   0x5   :  { %s33_s25 = sshll.u32 %s1136_s24, 4  ;;  %p973_p0 = scmp.ne.s32.totalorder %s1320_s1, %s972_s28  ;;  %s34_s25 = int_to_ptr.vmem [resolvable:$true] %s33_s25 }
   0x6   :  { %p976_p1 = scmp.lt.u32.totalorder %s972_s28, %s1320_s1 }
   0x8   :  { %p978_p2 = pnand %p976_p1, %p973_p0 }
   0xa   :  { %981 = shalt.err (!%p978_p2)
}
   0xb   :  { %s982_s10 = scalar_lea.vmem %s34_s25, 64  ;;  %p987_p4 = scmp.lt.s32.totalorder %s34_s25, %s34_s25 }
   0xc   :  { %p983_p3 = scmp.ne.s32.totalorder %s34_s25, %s982_s10  ;;  %p988_p5 = scmp.lt.s32.totalorder %s982_s10, %s982_s10 }
   0xe   :  { %p989_p6 = por %p988_p5, %p987_p4 }
  0x10   :  { %p990_p7 = pnand %p989_p6, %p983_p3 }
  0x12   :  { %993 = shalt.err (!%p990_p7)
}
  0x13   :  { %36 = dma.hbm_to_vmem [thread:$0]  %s1320_s1, 64, %s34_s25, [#allocation7]  }
  0x14   :  { %s1137_s13 = smov [#allocation9]   ;;  %s1138_s15 = smov [#allocation3]  }
  0x15   :  { %s56_s14 = sshll.u32 %s1137_s13, 4  ;;  %s23_s16 = sshll.u32 %s1138_s15, 4  ;;  %s57_s14 = int_to_ptr.vmem [resolvable:$true] %s56_s14  ;;  %s24_s16 = int_to_ptr.vmem [resolvable:$true] %s23_s16 }
  0x16   :  { %s994_s19 = scalar_lea.hbm %s1323_s4, 2048 }
  0x17   :  { %p995_p8 = scmp.ne.s32.totalorder %s1323_s4, %s994_s19  ;;  %p998_p9 = scmp.lt.u32.totalorder %s994_s19, %s1323_s4 }
  0x19   :  { %p1000_p10 = pnand %p998_p9, %p995_p8 }
  0x1b   :  { %1003 = shalt.err (!%p1000_p10)
}
  0x1c   :  { %s1004_s1 = scalar_lea.vmem %s57_s14, 2048  ;;  %p1009_p12 = scmp.lt.s32.totalorder %s57_s14, %s57_s14 }
  0x1d   :  { %p1005_p11 = scmp.ne.s32.totalorder %s57_s14, %s1004_s1  ;;  %p1010_p13 = scmp.lt.s32.totalorder %s1004_s1, %s1004_s1 }
  0x1f   :  { %p1011_p0 = por %p1010_p13, %p1009_p12 }
  0x21   :  { %p1012_p1 = pnand %p1011_p0, %p1005_p11 }
  0x23   :  { %1015 = shalt.err (!%p1012_p1)
}
  0x24   :  { %s1139_s24 = smov 128   ;;  %s1140_s25 = smov 8  }
  0x25   :  { %62 = dma.hbm_to_vmem [thread:$0]  %s1323_s4, 2048, %s57_s14, [#allocation10], %s1139_s24, %s1139_s24, %s1140_s25  }
  0x26   :  { %s1016_s30 = scalar_lea.hbm %s1319_s0, 128 }
  0x27   :  { %p1017_p2 = scmp.ne.s32.totalorder %s1319_s0, %s1016_s30  ;;  %p1020_p3 = scmp.lt.u32.totalorder %s1016_s30, %s1319_s0 }
  0x29   :  { %p1022_p4 = pnand %p1020_p3, %p1017_p2 }
  0x2b   :  { %1025 = shalt.err (!%p1022_p4)
}
  0x2c   :  { %s1026_s12 = scalar_lea.vmem %s24_s16, 128  ;;  %p1031_p6 = scmp.lt.s32.totalorder %s24_s16, %s24_s16 }
  0x2d   :  { %p1027_p5 = scmp.ne.s32.totalorder %s24_s16, %s1026_s12  ;;  %p1032_p7 = scmp.lt.s32.totalorder %s1026_s12, %s1026_s12 }
  0x2f   :  { %p1033_p8 = por %p1032_p7, %p1031_p6 }
  0x31   :  { %p1034_p9 = pnand %p1033_p8, %p1027_p5 }
  0x33   :  { %1037 = shalt.err (!%p1034_p9)
}
  0x34   :  { %26 = dma.hbm_to_vmem [thread:$0]  %s1319_s0, 128, %s24_s16, [#allocation4]  }
  0x35   :  { %s1141_s14 = smov [#allocation8]   ;;  %s1142_s17 = smov [#allocation11]  }
  0x36   :  { %s44_s15 = sshll.u32 %s1141_s14, 4  ;;  %s68_s18 = sshll.u32 %s1142_s17, 4  ;;  %s45_s15 = int_to_ptr.vmem [resolvable:$true] %s44_s15  ;;  %s69_s18 = int_to_ptr.vmem [resolvable:$true] %s68_s18 }
  0x37   :  { %s1038_s21 = scalar_lea.hbm %s1322_s3, 2048 }
  0x38   :  { %p1039_p10 = scmp.ne.s32.totalorder %s1322_s3, %s1038_s21  ;;  %p1042_p11 = scmp.lt.u32.totalorder %s1038_s21, %s1322_s3 }
  0x3a   :  { %p1044_p12 = pnand %p1042_p11, %p1039_p10 }
  0x3c   :  { %1047 = shalt.err (!%p1044_p12)
}
  0x3d   :  { %s1048_s0 = scalar_lea.vmem %s45_s15, 2048  ;;  %p1053_p0 = scmp.lt.s32.totalorder %s45_s15, %s45_s15 }
  0x3e   :  { %p1049_p13 = scmp.ne.s32.totalorder %s45_s15, %s1048_s0  ;;  %p1054_p1 = scmp.lt.s32.totalorder %s1048_s0, %s1048_s0 }
  0x40   :  { %p1055_p2 = por %p1054_p1, %p1053_p0 }
  0x42   :  { %p1056_p3 = pnand %p1055_p2, %p1049_p13 }
  0x44   :  { %1059 = shalt.err (!%p1056_p3)
}
  0x45   :  { %50 = dma.hbm_to_vmem [thread:$0]  %s1322_s3, 2048, %s45_s15, [#allocation7], %s1139_s24, %s1139_s24, %s1140_s25  }
  0x46   :  { %s1060_s30 = scalar_lea.hbm %s1324_s5, 2048 }
  0x47   :  { %p1061_p4 = scmp.ne.s32.totalorder %s1324_s5, %s1060_s30  ;;  %p1064_p5 = scmp.lt.u32.totalorder %s1060_s30, %s1324_s5 }
  0x49   :  { %p1066_p6 = pnand %p1064_p5, %p1061_p4 }
  0x4b   :  { %1069 = shalt.err (!%p1066_p6)
}
  0x4c   :  { %s1070_s12 = scalar_lea.vmem %s69_s18, 2048  ;;  %p1075_p8 = scmp.lt.s32.totalorder %s69_s18, %s69_s18 }
  0x4d   :  { %p1071_p7 = scmp.ne.s32.totalorder %s69_s18, %s1070_s12  ;;  %p1076_p9 = scmp.lt.s32.totalorder %s1070_s12, %s1070_s12 }
  0x4f   :  { %p1077_p10 = por %p1076_p9, %p1075_p8 }
  0x51   :  { %p1078_p11 = pnand %p1077_p10, %p1071_p7 }
  0x53   :  { %1081 = shalt.err (!%p1078_p11)
}
  0x54   :  { %74 = dma.hbm_to_vmem [thread:$0]  %s1324_s5, 2048, %s69_s18, [#allocation10], %s1139_s24, %s1139_s24, %s1140_s25  }
  0x55   :  { %s1143_s13 = smov [#allocation12]   ;;  %s1082_s19 = scalar_lea.hbm %s1325_s6, 2048 }
  0x56   :  { %s80_s14 = sshll.u32 %s1143_s13, 4  ;;  %p1083_p12 = scmp.ne.s32.totalorder %s1325_s6, %s1082_s19  ;;  %s81_s14 = int_to_ptr.vmem [resolvable:$true] %s80_s14 }
  0x57   :  { %p1086_p13 = scmp.lt.u32.totalorder %s1082_s19, %s1325_s6 }
  0x59   :  { %p1088_p0 = pnand %p1086_p13, %p1083_p12 }
  0x5b   :  { %1091 = shalt.err (!%p1088_p0)
}
  0x5c   :  { %s1092_s1 = scalar_lea.vmem %s81_s14, 2048  ;;  %p1097_p2 = scmp.lt.s32.totalorder %s81_s14, %s81_s14 }
  0x5d   :  { %p1093_p1 = scmp.ne.s32.totalorder %s81_s14, %s1092_s1  ;;  %p1098_p3 = scmp.lt.s32.totalorder %s1092_s1, %s1092_s1 }
  0x5f   :  { %p1099_p4 = por %p1098_p3, %p1097_p2 }
  0x61   :  { %p1100_p5 = pnand %p1099_p4, %p1093_p1 }
  0x63   :  { %1103 = shalt.err (!%p1100_p5)
}
  0x64   :  { %86 = dma.hbm_to_vmem [thread:$0]  %s1325_s6, 2048, %s81_s14, [#allocation13], %s1139_s24, %s1139_s24, %s1140_s25  }
  0x65   :  { %1126 = dma.done.wait [#allocation4], 128  }
  0x66   :  { %1127 = vsyncadd [#allocation4], 4294967168 }
  0x67   :  { %1128 = dma.done.wait [#allocation7], 2112  }
  0x68   :  { %1129 = vsyncadd [#allocation7], 4294965184 }
  0x69   :  { %1130 = dma.done.wait [#allocation10], 4096  }
  0x6a   :  { %1131 = vsyncadd [#allocation10], 4294963200 }
  0x6b   :  { %1132 = dma.done.wait [#allocation13], 2048  }
  0x6c   :  { %1133 = vsyncadd [#allocation13], 4294965248  ;;  %v1144_v0 = vmov 0   ;;  %v874_v1 = vld [vmem:[#allocation8 + $0x4] ss:$8 sps:$4 sm:$0xff]   ;;  %v106_v8 = vld [vmem:[#allocation3] sm:$0xff]  ;;  %v118_v13 = vlaneseq }
  0x6d   :  { %253 = vmatprep.mubr.bf16.mxu1 %v1144_v0  ;;  %559 = vmatprep.mubr.bf16.mxu0 %v1144_v0  ;;  %v876_v2 = vld [vmem:[#allocation8] ss:$8 sps:$4 sm:$0xff]   ;;  %v877_v3 = vld [vmem:[#allocation8 + $0x14] ss:$8 sps:$4 sm:$0xff]   ;;  %v879_v4 = vld [vmem:[#allocation8 + $0x10] ss:$8 sps:$4 sm:$0xff]  }
  0x6e   :  { %221 = vmatprep.subr.bf16.mxu1 %v874_v1  ;;  %v880_v5 = vld [vmem:[#allocation8 + $0x24] ss:$8 sps:$4 sm:$0xff]   ;;  %v882_v6 = vld [vmem:[#allocation8 + $0x20] ss:$8 sps:$4 sm:$0xff]   ;;  %v883_v7 = vld [vmem:[#allocation8 + $0x34] ss:$8 sps:$4 sm:$0xff]  }
  0x6f   :  { %222 = vmatpush1.bf16.msra.mxu1 %v876_v2  ;;  %v885_v9 = vld [vmem:[#allocation8 + $0x30] ss:$8 sps:$4 sm:$0xff]   ;;  %v792_v10 = vld [vmem:[%s1321_s2] ss:$0 sm:$0xff]  ;;  %v888_v15 = vld [vmem:[#allocation8 + $0x40] ss:$8 sps:$4 sm:$0xff]  }
  0x70   :  { %223 = vmatprep.subr.bf16.mxu1 %v877_v3  ;;  %v886_v11 = vld [vmem:[#allocation8 + $0x44] ss:$8 sps:$4 sm:$0xff]   ;;  %v113_v12 = vmul.f32 %v792_v10, %v106_v8  ;;  %v889_v16 = vld [vmem:[#allocation8 + $0x54] ss:$8 sps:$4 sm:$0xff]   ;;  %v1279_v17 = vshrl.u32 %v118_v13, 7  ;;  %vm712_vm1 = vcmask 1041409  }
  0x71   :  { %v108_v18 = vld [vmem:[%s1321_s2 + $0x1] sm:$0x1]  ;;  %v891_v19 = vld [vmem:[#allocation8 + $0x50] ss:$8 sps:$4 sm:$0xff]   ;;  %v894_v23 = vld [vmem:[#allocation8 + $0x60] ss:$8 sps:$4 sm:$0xff]  }
  0x72   :  { %v115_v14 = vmul.f32 3.0, %v113_v12  ;;  %v892_v20 = vld [vmem:[#allocation8 + $0x64] ss:$8 sps:$4 sm:$0xff]   ;;  %v114_v21 = vmul.f32 0.3, %v108_v18  ;;  %v120_v22 = vsub.s32 0, %v1279_v17 }
  0x73   :  { %224 = vmatpush1.bf16.msra.mxu1 %v879_v4  ;;  %v895_v24 = vld [vmem:[#allocation8 + $0x74] ss:$8 sps:$4 sm:$0xff]   ;;  %v897_v25 = vld [vmem:[#allocation8 + $0x70] ss:$8 sps:$4 sm:$0xff]   ;;  %v900_v28 = vld [vmem:[#allocation9 + $0x4] ss:$8 sps:$4 sm:$0xff]  }
  0x74   :  { %225 = vmatprep.subr.bf16.mxu1 %v880_v5  ;;  %970 = vtanh.f32 %v115_v14  ;;  %v121_v26 = vrot.slane %v114_v21, %v120_v22  ;;  %v898_v31 = vld [vmem:[#allocation9] ss:$8 sps:$4 sm:$0xff]   ;;  %v903_v34 = vld [vmem:[#allocation9 + $0x14] ss:$8 sps:$4 sm:$0xff]   ;;  %v901_v35 = vld [vmem:[#allocation9 + $0x10] ss:$8 sps:$4 sm:$0xff]  }
  0x75   :  { %v906_v36 = vld [vmem:[#allocation9 + $0x24] ss:$8 sps:$4 sm:$0xff]   ;;  %v904_v37 = vld [vmem:[#allocation9 + $0x20] ss:$8 sps:$4 sm:$0xff]   ;;  %v909_v38 = vld [vmem:[#allocation9 + $0x34] ss:$8 sps:$4 sm:$0xff]  }
  0x76   :  { %v907_v39 = vld [vmem:[#allocation9 + $0x30] ss:$8 sps:$4 sm:$0xff]   ;;  %v912_v40 = vld [vmem:[#allocation9 + $0x44] ss:$8 sps:$4 sm:$0xff]   ;;  %v910_v41 = vld [vmem:[#allocation9 + $0x40] ss:$8 sps:$4 sm:$0xff]  }
  0x77   :  { %226 = vmatpush1.bf16.msra.mxu1 %v882_v6  ;;  %v915_v42 = vld [vmem:[#allocation9 + $0x54] ss:$8 sps:$4 sm:$0xff]   ;;  %v913_v43 = vld [vmem:[#allocation9 + $0x50] ss:$8 sps:$4 sm:$0xff]   ;;  %v918_v44 = vld [vmem:[#allocation9 + $0x64] ss:$8 sps:$4 sm:$0xff]  }
  0x78   :  { %227 = vmatprep.subr.bf16.mxu1 %v883_v7  ;;  %v916_v45 = vld [vmem:[#allocation9 + $0x60] ss:$8 sps:$4 sm:$0xff]   ;;  %v921_v46 = vld [vmem:[#allocation9 + $0x74] ss:$8 sps:$4 sm:$0xff]   ;;  %v919_v47 = vld [vmem:[#allocation9 + $0x70] ss:$8 sps:$4 sm:$0xff]  }
  0x79   :  { %v262_v48 = vld [vmem:[#allocation6] sm:$0xf]  ;;  %v922_v49 = vld [vmem:[#allocation12 + $0x4] ss:$8 sps:$4 sm:$0xff]   ;;  %v924_v50 = vld [vmem:[#allocation12] ss:$8 sps:$4 sm:$0xff]  }
  0x7a   :  { %v925_v51 = vld [vmem:[#allocation12 + $0x14] ss:$8 sps:$4 sm:$0xff]   ;;  %527 = vmatprep.subr.bf16.mxu0 %v922_v49  ;;  %v927_v52 = vld [vmem:[#allocation12 + $0x10] ss:$8 sps:$4 sm:$0xff]   ;;  %v928_v53 = vld [vmem:[#allocation12 + $0x24] ss:$8 sps:$4 sm:$0xff]  }
  0x7b   :  { %228 = vmatpush1.bf16.msra.mxu1 %v885_v9  ;;  %528 = vmatpush1.bf16.msra.mxu0 %v924_v50  ;;  %v930_v54 = vld [vmem:[#allocation12 + $0x20] ss:$8 sps:$4 sm:$0xff]   ;;  %v931_v55 = vld [vmem:[#allocation12 + $0x34] ss:$8 sps:$4 sm:$0xff]   ;;  %v933_v56 = vld [vmem:[#allocation12 + $0x30] ss:$8 sps:$4 sm:$0xff]  }
  0x7c   :  { %229 = vmatprep.subr.bf16.mxu1 %v886_v11  ;;  %529 = vmatprep.subr.bf16.mxu0 %v925_v51  ;;  %v934_v57 = vld [vmem:[#allocation12 + $0x44] ss:$8 sps:$4 sm:$0xff]   ;;  %v936_v58 = vld [vmem:[#allocation12 + $0x40] ss:$8 sps:$4 sm:$0xff]   ;;  %v937_v59 = vld [vmem:[#allocation12 + $0x54] ss:$8 sps:$4 sm:$0xff]  }
  0x7d   :  { %v939_v60 = vld [vmem:[#allocation12 + $0x50] ss:$8 sps:$4 sm:$0xff]   ;;  %v940_v61 = vld [vmem:[#allocation12 + $0x64] ss:$8 sps:$4 sm:$0xff]   ;;  %v942_v62 = vld [vmem:[#allocation12 + $0x60] ss:$8 sps:$4 sm:$0xff]  }
  0x7e   :  { %v971_v27 = vpop.eup %970  ;;  %v943_v63 = vld [vmem:[#allocation12 + $0x74] ss:$8 sps:$4 sm:$0xff]   ;;  %v945_v1 = vld [vmem:[#allocation12 + $0x70] ss:$8 sps:$4 sm:$0xff]   ;;  %v948_v2 = vld [vmem:[#allocation11 + $0x4] ss:$8 sps:$4 sm:$0xff]  }
  0x7f   :  { %230 = vmatpush1.bf16.msra.mxu1 %v888_v15  ;;  %v117_v29 = vmul.f32 %v971_v27, %v113_v12  ;;  %530 = vmatpush1.bf16.msra.mxu0 %v927_v52  ;;  %v401_v7 = vand.u32 127, %v118_v13  ;;  %v946_v21 = vld [vmem:[#allocation11] ss:$8 sps:$4 sm:$0xff]   ;;  %v954_v13 = vld [vmem:[#allocation11 + $0x24] ss:$8 sps:$4 sm:$0xff]   ;;  %vm714_vm2 = vcmask 1043459  }
  0x80   :  { %231 = vmatprep.subr.bf16.mxu1 %v889_v16  ;;  %531 = vmatprep.subr.bf16.mxu0 %v928_v53  ;;  %v957_v27 = vld [vmem:[#allocation11 + $0x34] ss:$8 sps:$4 sm:$0xff]   ;;  %vm716_vm3 = vcmask 1045509   ;;  %vm718_vm4 = vcmask 1047559   ;;  %s1147_s2 = smov 64   ;;  %vm738_vm5 = vcmask 1041920  }
  0x81   :  { %v122_v30 = vmul.f32 %v121_v26, %v117_v29  ;;  %vm402_vm0 = vcmp.eq.s32.totalorder %v401_v7, 0  ;;  %v952_v26 = vld [vmem:[#allocation11 + $0x20] ss:$8 sps:$4 sm:$0xff]   ;;  %v960_v29 = vld [vmem:[#allocation11 + $0x44] ss:$8 sps:$4 sm:$0xff]   ;;  %vm739_vm6 = vcmask 1043458  }
  0x82   :  { %vm734_vm7 = vcmask 523264   ;;  %vm740_vm8 = vmor %vm739_vm6, %vm738_vm5  ;;  %vm741_vm9 = vcmask 521220   ;;  %s1148_s0 = smov [#allocation14]  }
  0x83   :  { %232 = vmatpush1.bf16.msra.mxu1 %v891_v19  ;;  %v123_v32 = vadd.f32 %v122_v30, %v113_v12  ;;  %532 = vmatpush1.bf16.msra.mxu0 %v930_v54  ;;  %v958_v30 = vld [vmem:[#allocation11 + $0x40] ss:$8 sps:$4 sm:$0xff]   ;;  %vm742_vm10 = vmor %vm741_vm9, %vm740_vm8  ;;  %s780_s16 = sshll.u32 %s1148_s0, 4  ;;  %s781_s16 = int_to_ptr.vmem [resolvable:$true] %s780_s16 }
  0x84   :  { %233 = vmatprep.subr.bf16.mxu1 %v892_v20  ;;  %533 = vmatprep.subr.bf16.mxu0 %v931_v55  ;;  %s1104_s27 = scalar_lea.vmem %s781_s16, 64  ;;  %p1109_p7 = scmp.lt.s32.totalorder %s781_s16, %s781_s16 }
  0x85   :  { %v124_v33 = vpack.c.bf16 %v123_v32, %v123_v32  ;;  %v961_v32 = vld [vmem:[#allocation11 + $0x50] ss:$8 sps:$4 sm:$0xff]   ;;  %p1105_p6 = scmp.ne.s32.totalorder %s781_s16, %s1104_s27  ;;  %p1110_p8 = scmp.lt.s32.totalorder %s1104_s27, %s1104_s27 }
  0x87   :  { %234 = vmatpush1.bf16.msra.mxu1 %v894_v23  ;;  %534 = vmatpush1.bf16.msra.mxu0 %v933_v56  ;;  %p1111_p9 = por %p1110_p8, %p1109_p7 }
  0x88   :  { %235 = vmatprep.subr.bf16.mxu1 %v895_v24  ;;  %535 = vmatprep.subr.bf16.mxu0 %v934_v57  ;;  %v951_v24 = vld [vmem:[#allocation11 + $0x14] ss:$8 sps:$4 sm:$0xff]  }
  0x89   :  { %p1112_p10 = pnand %p1111_p9, %p1105_p6 }
  0x8b   :  { %236 = vmatpush1.bf16.msra.mxu1 %v897_v25  ;;  %536 = vmatpush1.bf16.msra.mxu0 %v936_v58  ;;  %v949_v25 = vld [vmem:[#allocation11 + $0x10] ss:$8 sps:$4 sm:$0xff]  }
  0x8c   :  { %359 = vmatprep.subr.bf16.mxu1 %v900_v28  ;;  %537 = vmatprep.subr.bf16.mxu0 %v937_v59  ;;  %v955_v28 = vld [vmem:[#allocation11 + $0x30] ss:$8 sps:$4 sm:$0xff]  }
  0x8e   :  { %254 = vmatmul.mubr.bf16.vlgmr.msra.gmra.mrb[0].mxu1 %v124_v33  ;;  %v966_v33 = vld [vmem:[#allocation11 + $0x64] ss:$8 sps:$4 sm:$0xff]  }
  0x8f   :  { %360 = vmatpush1.bf16.msra.mxu1 %v898_v31  ;;  %391 = vmatprep.mubr.bf16.mxu1 %v1144_v0  ;;  %v963_v31 = vld [vmem:[#allocation11 + $0x54] ss:$8 sps:$4 sm:$0xff]  }
  0x90   :  { %361 = vmatprep.subr.bf16.mxu1 %v903_v34  ;;  %538 = vmatpush1.bf16.msra.mxu0 %v939_v60  ;;  %v969_v34 = vld [vmem:[#allocation11 + $0x74] ss:$8 sps:$4 sm:$0xff]  }
  0x91   :  { %539 = vmatprep.subr.bf16.mxu0 %v940_v61 }
  0x93   :  { %362 = vmatpush1.bf16.msra.mxu1 %v901_v35  ;;  %v967_v35 = vld [vmem:[#allocation11 + $0x70] ss:$8 sps:$4 sm:$0xff]  }
  0x94   :  { %363 = vmatprep.subr.bf16.mxu1 %v906_v36  ;;  %540 = vmatpush1.bf16.msra.mxu0 %v942_v62 }
  0x95   :  { %541 = vmatprep.subr.bf16.mxu0 %v943_v63 }
  0x97   :  { %364 = vmatpush1.bf16.msra.mxu1 %v904_v37  ;;  %v1145_v37 = vmov 0.0  }
  0x98   :  { %365 = vmatprep.subr.bf16.mxu1 %v909_v38  ;;  %542 = vmatpush1.bf16.msra.mxu0 %v945_v1  ;;  %722 = vst [vmem:[#allocation2 + $0x4] sm:$0xf] %v1145_v37  ;;  %v1146_v38 = vmov 1983009808  }
  0x99   :  { %648 = vmatprep.subr.bf16.mxu0 %v948_v2 }
  0x9b   :  { %366 = vmatpush1.bf16.msra.mxu1 %v907_v39  ;;  %v694_v39 = vunpack.c.l.s4 %v1146_v38 }
  0x9c   :  { %367 = vmatprep.subr.bf16.mxu1 %v912_v40 }
  0x9d   :  { %v695_v40 = vunpack.c.0.s8 %v694_v39 }
  0x9f   :  { %368 = vmatpush1.bf16.msra.mxu1 %v910_v41 }
  0xa0   :  { %369 = vmatprep.subr.bf16.mxu1 %v915_v42  ;;  %v698_v42 = vsub.s32 %v695_v40, %v1279_v17 }
  0xa3   :  { %370 = vmatpush1.bf16.msra.mxu1 %v913_v43 }
  0xa4   :  { %371 = vmatprep.subr.bf16.mxu1 %v918_v44 }
  0xa7   :  { %372 = vmatpush1.bf16.msra.mxu1 %v916_v45 }
  0xa8   :  { %373 = vmatprep.subr.bf16.mxu1 %v921_v46 }
  0xab   :  { %374 = vmatpush1.bf16.msra.mxu1 %v919_v47 }
  0xae   :  { %392 = vmatmul.mubr.bf16.vlgmr.msra.gmra.mrb[4].mxu1 %v262_v48 }
 0x161   :  { %v255_v3 = vpop.f32.mrb[0].mxu1 }
 0x162   :  { %v257_v4 = vpop.f32.mrb[1].mxu1 }
 0x163   :  { %v259_v5 = vpop.f32.mrb[2].mxu1 }
 0x164   :  { %v260_v6 = vpop.f32.mrb[3].mxu1 }
 0x181   :  { %v393_v8 = vpop.f32.mrb[4].mxu1 }
 0x182   :  { %v404_v9 = vmul.f32 %v393_v8, %v255_v3  ;;  %v409_v10 = vmul.f32 %v393_v8, %v257_v4  ;;  %v395_v11 = vpop.f32.mrb[5].mxu1 }
 0x183   :  { %v403_v12 = vmul.f32 %v395_v11, %v257_v4  ;;  %v410_v14 = vmul.f32 %v395_v11, %v255_v3  ;;  %v397_v15 = vpop.f32.mrb[6].mxu1 }
 0x184   :  { %v398_v16 = vpop.f32.mrb[7].mxu1 }
 0x185   :  { %v407_v18 = vsel %vm402_vm0, 0.0, %v403_v12  ;;  %v411_v19 = vadd.f32 %v410_v14, %v409_v10 }
 0x186   :  { %v408_v20 = vsub.f32 %v404_v9, %v407_v18 }
 0x187   :  { %v412_v22 = vsel %vm402_vm0, %v403_v12, %v411_v19 }
 0x188   :  { %v430_v23 = vpack.c.bf16 %v412_v22, %v412_v22  ;;  %v413_v36 = vpack.c.bf16 %v408_v20, %v408_v20 }
 0x18a   :  { %560 = vmatmul.mubr.bf16.vlgmr.msra.gmra.mrb[0].mxu0 %v430_v23 }
 0x18b   :  { %649 = vmatpush1.bf16.msra.mxu0 %v946_v21  ;;  %680 = vmatprep.mubr.bf16.mxu0 %v1144_v0  ;;  %v964_v0 = vld [vmem:[#allocation11 + $0x60] ss:$8 sps:$4 sm:$0xff]  }
 0x18c   :  { %650 = vmatprep.subr.bf16.mxu0 %v951_v24 }
 0x18f   :  { %651 = vmatpush1.bf16.msra.mxu0 %v949_v25 }
 0x190   :  { %652 = vmatprep.subr.bf16.mxu0 %v954_v13 }
 0x193   :  { %653 = vmatpush1.bf16.msra.mxu0 %v952_v26 }
 0x194   :  { %654 = vmatprep.subr.bf16.mxu0 %v957_v27 }
 0x197   :  { %655 = vmatpush1.bf16.msra.mxu0 %v955_v28 }
 0x198   :  { %656 = vmatprep.subr.bf16.mxu0 %v960_v29 }
 0x19b   :  { %657 = vmatpush1.bf16.msra.mxu0 %v958_v30 }
 0x19c   :  { %658 = vmatprep.subr.bf16.mxu0 %v963_v31 }
 0x19f   :  { %659 = vmatpush1.bf16.msra.mxu0 %v961_v32 }
 0x1a0   :  { %660 = vmatprep.subr.bf16.mxu0 %v966_v33 }
 0x1a3   :  { %661 = vmatpush1.bf16.msra.mxu0 %v964_v0 }
 0x1a4   :  { %662 = vmatprep.subr.bf16.mxu0 %v969_v34 }
 0x1a7   :  { %663 = vmatpush1.bf16.msra.mxu0 %v967_v35 }
 0x1aa   :  { %681 = vmatmul.mubr.bf16.vlgmr.msra.gmra.mrb[0].mxu0 %v413_v36 }
 0x27d   :  { %v682_v41 = vpop.f32.mrb[0].mxu0 }
 0x27e   :  { %v684_v43 = vpop.f32.mrb[1].mxu0 }
 0x27f   :  { %v691_v44 = vcombine.low %v682_v41, %v684_v43  ;;  %v692_v45 = vcombine.high %v682_v41, %v684_v43  ;;  %v686_v46 = vpop.f32.mrb[2].mxu0 }
 0x280   :  { %v687_v47 = vpop.f32.mrb[3].mxu0 }
 0x281   :  { %v699_v48 = vrot.slane %v691_v44, %v698_v42  ;;  %v706_v49 = vrot.slane %v692_v45, %v698_v42 }
 0x283   :  { %v711_v50 = vrot.slane %v706_v49, 7  ;;  %v724_v51 = vrot.slane %v699_v48, 1  ;;  %v745_v52 = vcombine.high %v699_v48, %v699_v48  ;;  %v746_v53 = vcombine.high %v706_v49, %v706_v49 }
 0x285   :  { %v713_v54 = vsel %vm712_vm1, %v711_v50, %v699_v48  ;;  %v749_v55 = vrot.slane %v746_v53, 7  ;;  %v758_v56 = vrot.slane %v745_v52, 1  ;;  %v727_v17 = vsel %vm712_vm1, %v706_v49, %v724_v51 }
 0x286   :  { %v728_v57 = vsel %vm714_vm2, %v706_v49, %v727_v17  ;;  %v715_v58 = vsel %vm714_vm2, %v711_v50, %v713_v54 }
 0x287   :  { %v750_v59 = vsel %vm712_vm1, %v749_v55, %v745_v52  ;;  %v729_v60 = vsel %vm716_vm3, %v706_v49, %v728_v57  ;;  %v717_v61 = vsel %vm716_vm3, %v711_v50, %v715_v58  ;;  %v761_v62 = vsel %vm712_vm1, %v746_v53, %v758_v56 }
 0x288   :  { %v730_v63 = vsel %vm718_vm4, %v706_v49, %v729_v60  ;;  %v751_v1 = vsel %vm714_vm2, %v749_v55, %v750_v59  ;;  %v719_v2 = vsel %vm718_vm4, %v711_v50, %v717_v61  ;;  %v762_v3 = vsel %vm714_vm2, %v746_v53, %v761_v62 }
 0x289   :  { %v752_v4 = vsel %vm716_vm3, %v749_v55, %v751_v1  ;;  %731 = vrot.lane.b32.xlu0 %v730_v63, %s1147_s2  ;;  %721 = vst [vmem:[#allocation2] sm:$0xf] %v719_v2  ;;  %v763_v5 = vsel %vm716_vm3, %v746_v53, %v762_v3 }
 0x28a   :  { %v753_v6 = vsel %vm718_vm4, %v749_v55, %v752_v4  ;;  %v764_v7 = vsel %vm718_vm4, %v746_v53, %v763_v5 }
 0x28d   :  { %765 = vrot.lane.b32.xlu0 %v764_v7, %s1147_s2 }
 0x290   :  { %v723_v10 = vld [vmem:[#allocation2] sm:$0x3f] }
 0x2fb   :  { %v732_v8 = vpop.permute.xlu0 %731 }
 0x2fc   :  { %v733_v9 = vrot.slane %v732_v8, 6 }
 0x2fe   :  { %v735_v11 = vsel %vm734_vm7, %v733_v9, %v732_v8 }
 0x2ff   :  { %v737_v12 = vadd.f32 %v735_v11, %v723_v10  ;;  %v766_v16 = vpop.permute.xlu0 %765 }
 0x300   :  { %v767_v18 = vrot.slane %v766_v16, 6 }
 0x301   :  { %743 = vst.msk [vmem:[#allocation2] sm:$0x3f] %vm742_vm10, %v737_v12 }
 0x302   :  { %v768_v20 = vsel %vm734_vm7, %v767_v18, %v766_v16 }
 0x308   :  { %v744_v14 = vld [vmem:[#allocation2 + $0x2] sm:$0xf] }
 0x309   :  { %v755_v15 = vadd.f32 %v753_v6, %v744_v14 }
 0x30b   :  { %756 = vst [vmem:[#allocation2 + $0x2] sm:$0xf] %v755_v15 }
 0x312   :  { %v757_v19 = vld [vmem:[#allocation2 + $0x2] sm:$0x3f] }
 0x313   :  { %v770_v21 = vadd.f32 %v768_v20, %v757_v19 }
 0x315   :  { %771 = vst.msk [vmem:[#allocation2 + $0x2] sm:$0x3f] %vm742_vm10, %v770_v21 }
 0x31c   :  { %v772_v22 = vld [vmem:[#allocation2] sm:$0xf] }
 0x31d   :  { %773 = vst [vmem:[#allocation14] sm:$0xf] %v772_v22 }
 0x31e   :  { %1115 = shalt.err (!%p1112_p10)
}
 0x31f   :  { %s1116_s30 = scalar_lea.hbm %s1326_s7, 64 }
 0x320   :  { %p1117_p11 = scmp.ne.s32.totalorder %s1326_s7, %s1116_s30  ;;  %p1120_p12 = scmp.lt.u32.totalorder %s1116_s30, %s1326_s7 }
 0x322   :  { %p1122_p13 = pnand %p1120_p12, %p1117_p11 }
 0x324   :  { %1125 = shalt.err (!%p1122_p13)
}
 0x325   :  { %783 = dma.vmem_to_hbm [thread:$0]  %s781_s16, 64, %s1326_s7, [#allocation5]  }
 0x326   :  { %1134 = dma.done.wait [#allocation5], 64  }
 0x327   :  { %1135 = vsyncadd [#allocation5], 4294967232 }
 0x328   :  { %787 = vsyncpa [#allocation4], 1 }
 0x329   :  { %788 = vsyncpa [#allocation7], 1 }
 0x32a   :  { %789 = vsyncpa [#allocation10], 1 }
 0x32b   :  { %790 = vsyncpa [#allocation13], 1 }
 0x32c   :  { %791 = vsyncpa [#allocation5], 1 }

</bundles_post_ra>
